<compile_context>
chip_gen: v6e
topology: v6e:2x2x1
jax: 0.10.0
libtpu: 0.0.40
codegen_flags: <defaults>
</compile_context>

<pallas_src>
import jax
import jax.numpy as jnp
from jax.experimental import pallas as pl
from jax.experimental.pallas import tpu as pltpu


# -------------------------- Pallas kernel (hot path) ------------------------

def _make_mlp_kernel(n_vars, out_nums):
    """Kernel: per-variable (n_i, ts) inputs -> per-output (n_o, ts) tiles."""

    def kernel(*refs):
        x_refs = refs[:n_vars]
        w1t_ref, b1_ref, w2t_ref, b2_ref = refs[n_vars:n_vars + 4]
        o_refs = refs[n_vars + 4:]

        # Feature concat happens on the sublane axis in VMEM, never in HBM.
        if n_vars > 1:
            x = jnp.concatenate([r[...] for r in x_refs], axis=0)   # (n_in, ts)
        else:
            x = x_refs[0][...]

        # Layer 1: contract features (sublanes); spatial stays on lanes.
        h = jnp.dot(w1t_ref[...], x, preferred_element_type=jnp.float32)
        h = jnp.maximum(h + b1_ref[...], 0.0)          # bias + ReLU in f32
        h = h.astype(w2t_ref.dtype)                    # bf16 re-cast if bf16 IO

        # Layer 2.
        y = jnp.dot(w2t_ref[...], h, preferred_element_type=jnp.float32)
        y = y + b2_ref[...]

        # Unstack directly into the per-variable (lane-dense) output tiles.
        off = 0
        for o_ref, n in zip(o_refs, out_nums):
            o_ref[...] = y[off:off + n].astype(o_ref.dtype)
            off += n

    return kernel


def _choose_spatial_tile(S, max_tile=2048, min_tiles=1):
    """Largest 128-multiple divisor of S up to max_tile (and >= min_tiles
    grid steps when possible); falls back to the full dim."""
    cap = min(S, max_tile)
    if min_tiles > 1:
        cap = min(cap, max(128, S // min_tiles))
    best = None
    t = 128
    while t <= cap:
        if S % t == 0:
            best = t
        t += 128
    return best if best is not None else S


def _apparent_source_pallas(x_vars, w1t, b1c, w2t, b2c, out_nums, *, ts):
    """x_vars: list of (B, n_i, S) arrays; weights pre-transposed.

    Returns a tuple of (B, n_o, S) float32 arrays, one per output variable.
    """
    B, _, S = x_vars[0].shape
    n_vars = len(x_vars)
    grid = (B, S // ts)

    def _xspec(num):
        return pl.BlockSpec((None, num, ts), lambda b, s: (b, 0, s))

    in_specs = [_xspec(int(v.shape[1])) for v in x_vars] + [
        pl.BlockSpec(w1t.shape, lambda b, s: (0, 0)),
        pl.BlockSpec(b1c.shape, lambda b, s: (0, 0)),
        pl.BlockSpec(w2t.shape, lambda b, s: (0, 0)),
        pl.BlockSpec(b2c.shape, lambda b, s: (0, 0)),
    ]
    out_specs = tuple(
        pl.BlockSpec((None, n, ts), lambda b, s: (b, 0, s)) for n in out_nums
    )
    out_shape = tuple(
        jax.ShapeDtypeStruct((B, n, S), jnp.float32) for n in out_nums
    )

    kernel = _make_mlp_kernel(n_vars, tuple(out_nums))

    return pl.pallas_call(
        kernel,
        out_shape=out_shape,
        grid_spec=pltpu.PrefetchScalarGridSpec(
            num_scalar_prefetch=0,
            grid=grid,
            in_specs=in_specs,
            out_specs=out_specs,
        ),
        compiler_params=pltpu.CompilerParams(
            dimension_semantics=("parallel", "parallel")),
    )(*x_vars, w1t, b1c, w2t, b2c)


# ---------------- ApparentSource glue (plain JAX, matches PyTorch) ----------

def _to_native_3d(v, num):
    """(*, z, y, x) or (*, y, x) -> ((B, num, Y*X), lead, (Y, X)).

    Pure layout-preserving reshapes (no HBM data movement)."""
    if num == 1:
        lead, (Y, X) = v.shape[:-2], v.shape[-2:]
    else:
        lead, (Y, X) = v.shape[:-3], v.shape[-2:]
        assert v.shape[-3] == num, (v.shape, num)
    B = 1
    for d in lead:
        B *= int(d)
    return v.reshape(B, num, Y * X), lead, (Y, X)


def apparent_source_forward(x, params, input_specs, output_specs, *,
                            io_dtype=None, max_spatial_tile=2048):
    """Equivalent of ApparentSource.forward with an MLP inner model.

    io_dtype: optionally cast activations/weights to e.g. jnp.bfloat16
    (recommended on v6e/v7x); accumulation and outputs stay float32.
    """
    w1, b1, w2, b2 = params
    hidden = w1.shape[1]
    out_nums = [n for _, n in output_specs]
    assert sum(n for _, n in input_specs) == w1.shape[0]
    assert sum(out_nums) == w2.shape[1]

    # Inputs stay in the native (*, z, y, x) layout -- just flatten spatial.
    x_vars, lead, spatial = [], None, None
    for name, num in input_specs:
        v3, ld, sp = _to_native_3d(x[name], num)
        if lead is None:
            lead, spatial = ld, sp
        else:
            assert ld == lead and sp == spatial, (name, ld, sp)
        x_vars.append(v3)
    B = x_vars[0].shape[0]
    Y, X = spatial
    S = Y * X

    # Weights pre-transposed once (outside the hot path) so the kernel
    # contracts features on the sublane axis; biases stay f32 as columns.
    w1t = jnp.asarray(w1).T                              # (hidden, n_in)
    w2t = jnp.asarray(w2).T                              # (n_out, hidden)
    b1c = jnp.asarray(b1).reshape(hidden, 1).astype(jnp.float32)
    b2c = jnp.asarray(b2).reshape(-1, 1).astype(jnp.float32)

    if io_dtype is not None:
        x_vars = [v.astype(io_dtype) for v in x_vars]
        w1t = w1t.astype(io_dtype)
        w2t = w2t.astype(io_dtype)

    ts = _choose_spatial_tile(S, max_spatial_tile,
                              min_tiles=1 if B >= 2 else 2)

    outs = _apparent_source_pallas(x_vars, w1t, b1c, w2t, b2c, out_nums, ts=ts)

    # Outputs are already in the PyTorch layout; only free reshapes remain
    # (num == 1 -> squeeze the height dim, matching _height_to_original_dim).
    result = {}
    for (name, num), o in zip(output_specs, outs):
        if num == 1:
            result[name] = o.reshape(*lead, Y, X)
        else:
            result[name] = o.reshape(*lead, num, Y, X)
    return result


# -------- pure-JAX reference (mirrors the original PyTorch transposes) ------

def _height_to_last_dim(x, input_specs):
    out = {}
    for name, num in input_specs:
        v = x[name]
        if num == 1:
            v = jnp.expand_dims(v, -3)              # unsqueeze(z_axis=-3)
        out[name] = jnp.swapaxes(v, -3, -1)         # transpose(z_axis, -1)
    return out


def _height_to_original_dim(out, output_specs):
    res = {}
    for name, num in output_specs:
        v = out[name]
        if num == 1:
            res[name] = v[..., 0]                   # squeeze(-1)
        else:
            res[name] = jnp.swapaxes(v, -3, -1)     # transpose(z_axis, -1)
    return res


# --------------------------------- demo -------------------------------------

if __name__ == "__main__":
    # Variable specs (name, num-z-levels) -- mirrors VariableList.from_tuples.
    nz = 8
    input_specs = [("QT", nz), ("SLI", nz), ("SST", 1), ("SOLIN", 1)]
    output_specs = [("QT", nz), ("SLI", nz)]        # Q1 / Q2 apparent sources

    B, Y, X = 2, 16, 16
    n_in = sum(n for _, n in input_specs)           # 18
    n_out = sum(n for _, n in output_specs)         # 16
    hidden = 32

    key = jax.random.PRNGKey(0)
    kqt, ksli, ksst, ksol, kw1, kb1, kw2, kb2 = jax.random.split(key, 8)

    # Inputs: (*, z, y, x) for 3-D vars, (*, y, x) for 2-D vars (PyTorch layout).
    x = {
        "QT":    jax.random.normal(kqt,  (B, nz, Y, X), jnp.float32),
        "SLI":   jax.random.normal(ksli, (B, nz, Y, X), jnp.float32),
        "SST":   jax.random.normal(ksst, (B, Y, X),     jnp.float32),
        "SOLIN": jax.random.normal(ksol, (B, Y, X),     jnp.float32),
    }

    # Deterministic synthetic parameters for the inner MLP model.
    w1 = jax.random.normal(kw1, (n_in, hidden), jnp.float32) * 0.1
    b1 = jax.random.normal(kb1, (1, hidden), jnp.float32) * 0.1
    w2 = jax.random.normal(kw2, (hidden, n_out), jnp.float32) * 0.1
    b2 = jax.random.normal(kb2, (1, n_out), jnp.float32) * 0.1
    params = (w1, b1, w2, b2)

    # ---- f32 path ----
    out = apparent_source_forward(x, params, input_specs, output_specs)
    out = jax.block_until_ready(out)

    # Pure-JAX reference following the original (transposed) formulation.
    def ref_forward(x):
        r = _height_to_last_dim(x, input_specs)
        s = jnp.concatenate([r[n] for n, _ in input_specs], axis=-1)
        h = jnp.maximum(s @ w1 + b1[0], 0.0)
        y = h @ w2 + b2[0]
        outs, off = {}, 0
        for n, num in output_specs:
            outs[n] = y[..., off:off + num]
            off += num
        return _height_to_original_dim(outs, output_specs)

    ref = ref_forward(x)
    for name, num in output_specs:
        assert out[name].shape == (B, nz, Y, X), out[name].shape
        assert jnp.allclose(out[name], ref[name], atol=1e-5, rtol=1e-5)

    # ---- bf16-IO path (recommended on v6e / v7x; f32 accumulation) ----
    out_bf16 = apparent_source_forward(x, params, input_specs, output_specs,
                                       io_dtype=jnp.bfloat16)
    out_bf16 = jax.block_until_ready(out_bf16)
    for name, num in output_specs:
        assert out_bf16[name].shape == (B, nz, Y, X)
        assert jnp.allclose(out_bf16[name], ref[name], atol=1e-1, rtol=1e-1)

    print("KERNEL_OK")
</pallas_src>

<mosaic_0001>
module attributes {stable_mosaic.version = 11 : i64} {
  func.func @kernel(%arg0: i32, %arg1: i32, %arg2: memref<1x8x256xf32, #tpu.memory_space<vmem>>, %arg3: memref<1x8x256xf32, #tpu.memory_space<vmem>>, %arg4: memref<1x1x256xf32, #tpu.memory_space<vmem>>, %arg5: memref<1x1x256xf32, #tpu.memory_space<vmem>>, %arg6: memref<32x18xf32, #tpu.memory_space<vmem>>, %arg7: memref<32x1xf32, #tpu.memory_space<vmem>>, %arg8: memref<16x32xf32, #tpu.memory_space<vmem>>, %arg9: memref<16x1xf32, #tpu.memory_space<vmem>>, %arg10: memref<1x8x256xf32, #tpu.memory_space<vmem>>, %arg11: memref<1x8x256xf32, #tpu.memory_space<vmem>>) attributes {dimension_semantics = [#tpu.dimension_semantics<parallel>, #tpu.dimension_semantics<parallel>], iteration_bounds = array<i64: 2, 1>, scalar_prefetch = 0 : i64, scratch_operands = 0 : i64, tpu.core_type = #tpu.core_type<tc>, window_params = [{transform_indices = @transform_0, window_bounds = array<i64: 1, 8, 256>}, {transform_indices = @transform_1, window_bounds = array<i64: 1, 8, 256>}, {transform_indices = @transform_2, window_bounds = array<i64: 1, 1, 256>}, {transform_indices = @transform_3, window_bounds = array<i64: 1, 1, 256>}, {pipeline_mode = #tpu.pipeline_mode<synchronous>, transform_indices = @transform_4, window_bounds = array<i64: 32, 18>}, {pipeline_mode = #tpu.pipeline_mode<synchronous>, transform_indices = @transform_5, window_bounds = array<i64: 32, 1>}, {pipeline_mode = #tpu.pipeline_mode<synchronous>, transform_indices = @transform_6, window_bounds = array<i64: 16, 32>}, {pipeline_mode = #tpu.pipeline_mode<synchronous>, transform_indices = @transform_7, window_bounds = array<i64: 16, 1>}, {transform_indices = @transform_8, window_bounds = array<i64: 1, 8, 256>}, {transform_indices = @transform_9, window_bounds = array<i64: 1, 8, 256>}]} {
    %c0 = arith.constant 0 : index
    %c0_0 = arith.constant 0 : index
    %c0_1 = arith.constant 0 : index
    %0 = vector.load %arg2[%c0, %c0_0, %c0_1] : memref<1x8x256xf32, #tpu.memory_space<vmem>>, vector<1x8x256xf32>
    %1 = vector.shape_cast %0 : vector<1x8x256xf32> to vector<8x256xf32>
    %c0_2 = arith.constant 0 : index
    %c0_3 = arith.constant 0 : index
    %c0_4 = arith.constant 0 : index
    %2 = vector.load %arg3[%c0_2, %c0_3, %c0_4] : memref<1x8x256xf32, #tpu.memory_space<vmem>>, vector<1x8x256xf32>
    %3 = vector.shape_cast %2 : vector<1x8x256xf32> to vector<8x256xf32>
    %c0_5 = arith.constant 0 : index
    %c0_6 = arith.constant 0 : index
    %c0_7 = arith.constant 0 : index
    %4 = vector.load %arg4[%c0_5, %c0_6, %c0_7] : memref<1x1x256xf32, #tpu.memory_space<vmem>>, vector<1x1x256xf32>
    %5 = vector.shape_cast %4 : vector<1x1x256xf32> to vector<1x256xf32>
    %c0_8 = arith.constant 0 : index
    %c0_9 = arith.constant 0 : index
    %c0_10 = arith.constant 0 : index
    %6 = vector.load %arg5[%c0_8, %c0_9, %c0_10] : memref<1x1x256xf32, #tpu.memory_space<vmem>>, vector<1x1x256xf32>
    %7 = vector.shape_cast %6 : vector<1x1x256xf32> to vector<1x256xf32>
    %8 = tpu.concatenate %1, %3, %5, %7 in 0 : vector<8x256xf32>, vector<8x256xf32>, vector<1x256xf32>, vector<1x256xf32> -> vector<18x256xf32>
    %c0_11 = arith.constant 0 : index
    %c0_12 = arith.constant 0 : index
    %9 = vector.load %arg6[%c0_11, %c0_12] : memref<32x18xf32, #tpu.memory_space<vmem>>, vector<32x18xf32>
    %cst = arith.constant dense<0.000000e+00> : vector<32x256xf32>
    %10 = tpu.matmul %9, %8, %cst {dimension_numbers = #tpu.dot_dimension_numbers<[1], [0], [0], [1], [0, 0, 1, 1], [], []>} : vector<32x18xf32>, vector<18x256xf32>, vector<32x256xf32> -> vector<32x256xf32>
    %c0_13 = arith.constant 0 : index
    %c0_14 = arith.constant 0 : index
    %11 = vector.load %arg7[%c0_13, %c0_14] : memref<32x1xf32, #tpu.memory_space<vmem>>, vector<32x1xf32>
    %12 = vector.broadcast %11 : vector<32x1xf32> to vector<32x256xf32>
    %13 = arith.addf %10, %12 : vector<32x256xf32>
    %cst_15 = arith.constant 0.000000e+00 : f32
    %14 = vector.broadcast %cst_15 : f32 to vector<32x256xf32>
    %15 = arith.maximumf %13, %14 : vector<32x256xf32>
    %c0_16 = arith.constant 0 : index
    %c0_17 = arith.constant 0 : index
    %16 = vector.load %arg8[%c0_16, %c0_17] : memref<16x32xf32, #tpu.memory_space<vmem>>, vector<16x32xf32>
    %cst_18 = arith.constant dense<0.000000e+00> : vector<16x256xf32>
    %17 = tpu.matmul %16, %15, %cst_18 {dimension_numbers = #tpu.dot_dimension_numbers<[1], [0], [0], [1], [0, 0, 1, 1], [], []>} : vector<16x32xf32>, vector<32x256xf32>, vector<16x256xf32> -> vector<16x256xf32>
    %c0_19 = arith.constant 0 : index
    %c0_20 = arith.constant 0 : index
    %18 = vector.load %arg9[%c0_19, %c0_20] : memref<16x1xf32, #tpu.memory_space<vmem>>, vector<16x1xf32>
    %19 = vector.broadcast %18 : vector<16x1xf32> to vector<16x256xf32>
    %20 = arith.addf %17, %19 : vector<16x256xf32>
    %21 = vector.extract_strided_slice %20 {offsets = [0, 0], sizes = [8, 256], strides = [1, 1]} : vector<16x256xf32> to vector<8x256xf32>
    %c0_21 = arith.constant 0 : index
    %c0_22 = arith.constant 0 : index
    %c0_23 = arith.constant 0 : index
    %22 = vector.load %arg10[%c0_21, %c0_22, %c0_23] : memref<1x8x256xf32, #tpu.memory_space<vmem>>, vector<1x8x256xf32>
    %23 = vector.shape_cast %22 : vector<1x8x256xf32> to vector<8x256xf32>
    %24 = vector.shape_cast %21 : vector<8x256xf32> to vector<1x8x256xf32>
    tpu.vector_store %arg10[%c0_21, %c0_22, %c0_23], %24 {strides = array<i32>} : memref<1x8x256xf32, #tpu.memory_space<vmem>>, vector<1x8x256xf32>,
    %25 = vector.extract_strided_slice %20 {offsets = [8, 0], sizes = [8, 256], strides = [1, 1]} : vector<16x256xf32> to vector<8x256xf32>
    %c0_24 = arith.constant 0 : index
    %c0_25 = arith.constant 0 : index
    %c0_26 = arith.constant 0 : index
    %26 = vector.load %arg11[%c0_24, %c0_25, %c0_26] : memref<1x8x256xf32, #tpu.memory_space<vmem>>, vector<1x8x256xf32>
    %27 = vector.shape_cast %26 : vector<1x8x256xf32> to vector<8x256xf32>
    %28 = vector.shape_cast %25 : vector<8x256xf32> to vector<1x8x256xf32>
    tpu.vector_store %arg11[%c0_24, %c0_25, %c0_26], %28 {strides = array<i32>} : memref<1x8x256xf32, #tpu.memory_space<vmem>>, vector<1x8x256xf32>,
    return
  }
  func.func @transform_0(%arg0: i32, %arg1: i32) -> (i32, i32, i32) {
    %c0_i32 = arith.constant 0 : i32
    %c0_i32_0 = arith.constant 0 : i32
    return %arg0, %c0_i32, %arg1 : i32, i32, i32
  }
  func.func @transform_1(%arg0: i32, %arg1: i32) -> (i32, i32, i32) {
    %c0_i32 = arith.constant 0 : i32
    %c0_i32_0 = arith.constant 0 : i32
    return %arg0, %c0_i32, %arg1 : i32, i32, i32
  }
  func.func @transform_2(%arg0: i32, %arg1: i32) -> (i32, i32, i32) {
    %c0_i32 = arith.constant 0 : i32
    %c0_i32_0 = arith.constant 0 : i32
    return %arg0, %c0_i32, %arg1 : i32, i32, i32
  }
  func.func @transform_3(%arg0: i32, %arg1: i32) -> (i32, i32, i32) {
    %c0_i32 = arith.constant 0 : i32
    %c0_i32_0 = arith.constant 0 : i32
    return %arg0, %c0_i32, %arg1 : i32, i32, i32
  }
  func.func @transform_4(%arg0: i32, %arg1: i32) -> (i32, i32) {
    %c0_i32 = arith.constant 0 : i32
    %c0_i32_0 = arith.constant 0 : i32
    %c0_i32_1 = arith.constant 0 : i32
    return %c0_i32, %c0_i32_0 : i32, i32
  }
  func.func @transform_5(%arg0: i32, %arg1: i32) -> (i32, i32) {
    %c0_i32 = arith.constant 0 : i32
    %c0_i32_0 = arith.constant 0 : i32
    %c0_i32_1 = arith.constant 0 : i32
    return %c0_i32, %c0_i32_0 : i32, i32
  }
  func.func @transform_6(%arg0: i32, %arg1: i32) -> (i32, i32) {
    %c0_i32 = arith.constant 0 : i32
    %c0_i32_0 = arith.constant 0 : i32
    %c0_i32_1 = arith.constant 0 : i32
    return %c0_i32, %c0_i32_0 : i32, i32
  }
  func.func @transform_7(%arg0: i32, %arg1: i32) -> (i32, i32) {
    %c0_i32 = arith.constant 0 : i32
    %c0_i32_0 = arith.constant 0 : i32
    %c0_i32_1 = arith.constant 0 : i32
    return %c0_i32, %c0_i32_0 : i32, i32
  }
  func.func @transform_8(%arg0: i32, %arg1: i32) -> (i32, i32, i32) {
    %c0_i32 = arith.constant 0 : i32
    %c0_i32_0 = arith.constant 0 : i32
    return %arg0, %c0_i32, %arg1 : i32, i32, i32
  }
  func.func @transform_9(%arg0: i32, %arg1: i32) -> (i32, i32, i32) {
    %c0_i32 = arith.constant 0 : i32
    %c0_i32_0 = arith.constant 0 : i32
    return %arg0, %c0_i32, %arg1 : i32, i32, i32
  }
}

</mosaic_0001>

<bundles_post_ra>
// kernel: tpu_custom_call.1
= control target key start
LH: loop header
LB: loop body
LE: loop exit
PB: predicated region body
PF: predicated region fallthrough
CT: control target
= control target key end

     0   :  { %15 = vsyncpa [#allocation3], 0  ;;  %s1407_s0 = inlined_call_operand.vmem [shape: f32[2,8,256], index: 0, kind: input, shape index: {}]   ;;  %s1408_s1 = inlined_call_operand.vmem [shape: f32[2,8,256], index: 1, kind: input, shape index: {}]   ;;  %s1409_s2 = inlined_call_operand.vmem [shape: f32[2,1,256], index: 2, kind: input, shape index: {}]   ;;  %s1410_s3 = inlined_call_operand.vmem [shape: f32[2,1,256], index: 3, kind: input, shape index: {}]   ;;  %s1411_s4 = inlined_call_operand.vmem [shape: f32[32,18], index: 4, kind: input, shape index: {}]   ;;  %s1412_s5 = inlined_call_operand.vmem [shape: f32[32,1], index: 5, kind: input, shape index: {}]   ;;  %s1413_s6 = inlined_call_operand.vmem [shape: f32[16,32], index: 6, kind: input, shape index: {}]   ;;  %s1414_s7 = inlined_call_operand.vmem [shape: f32[16,1], index: 7, kind: input, shape index: {}]   ;;  %s1415_s8 = inlined_call_operand.hbm [shape: f32[2,8,256], index: 8, kind: output, shape index: {0}]   ;;  %s1416_s9 = inlined_call_operand.hbm [shape: f32[2,8,256], index: 9, kind: output, shape index: {1}]  }
   0x1   :  { %17 = vsyncpa [#allocation3 + $0x1], 0 }
   0x2   :  { %18 = vsyncpa [#allocation5], 0 }
   0x3   :  { %20 = vsyncpa [#allocation5 + $0x1], 0  ;;  %s1212_s30 = smov 0   ;;  %s1214_s10 = smov 0  }
   0x4   :  { %s1216_s11 = smov 0   ;;  %s1218_s12 = smov 0  }
   0x5   :  { %s1220_s13 = smov 0   ;;  %s1222_s14 = smov 0  }
   0x6 LB: > { %1420 = sst [smem:[#allocation8_spill]] %s1152_s13  ;;  %s953_s15 = sadd.s32 4294967295, %s1156_s14   ;;  %s1156_s14 = sphi %s1222_s14, %s26_s14   ;;  %s1152_s13 = sphi %s1220_s13, %s1429_s13   ;;  %s1148_s12 = sphi %s1218_s12, %s1428_s12   ;;  %s1144_s11 = sphi %s1216_s11, %s1432_s11   ;;  %s1140_s10 = sphi %s1214_s10, %s1431_s10   ;;  %s1136_s30 = sphi %s1212_s30, %s1430_s30  }
   0x7   : > { %s954_s16 = sadd.s32 4294967294, %s1156_s14   ;;  %s38_s17 = sadd.s32 1, %s1152_s13 }
   0x8   : > { %s243_s18 = sadd.s32 1, %s1144_s11  ;;  %p40_p0 = scmp.ge.s32.totalorder %s38_s17, 2 }
   0x9   : > { %p253_p1 = scmp.ne.s32.totalorder %s1144_s11, %s1140_s10  ;;  %p254_p2 = scmp.eq.s32.totalorder %s953_s15, 1 }
   0xa   : > { %p259_p3 = scmp.ne.s32.totalorder %s1140_s10, %s1136_s30  ;;  %s1434_s17 = smov (%p40_p0, %s38_s17), 0 }
   0xb   : > { %1421 = sst [smem:[#allocation9_spill]] %s1434_s17  ;;  %p1252_p4 = por %p254_p2, %p253_p1 }
   0xc   : > { %p260_p5 = scmp.eq.s32.totalorder %s954_s16, 1  ;;  %s238_s20 = ssub.s32 %s1152_s13, %s1434_s17 }
   0xd   : > { %p957_p6 = scmp.ge.s32.totalorder %s1156_s14, 1  ;;  %p241_p7 = scmp.eq.s32.totalorder %s238_s20, 0 }
   0xe   : > { %p1259_p8 = por %p260_p5, %p259_p3  ;;  %p368_p9 = scmp.lt.s32.totalorder %s1156_s14, 3 }
   0xf   : > { %s1265_s22 = scalar_select %p241_p7, %s1144_s11, %s243_s18  }
  0x10   : > { %p369_p10 = pnand %p957_p6, %p368_p9 }
  0x11   : > { %1424 = sst [smem:[#allocation10_spill]] %s1265_s22  ;;  %p439_p11 = scmp.lt.s32.totalorder (!%p369_p10), %s1148_s12, 1 }
  0x12   : > { %372 = sbr.rel (%p369_p10) target bundleno = 491 (0x1eb), region = 52  ;;  %s1160_s18 = smov (!%p369_p10), [#allocation2]  }
  0x13   : > { %s1054_s20 = sshll.u32 (!%p369_p10), %s1160_s18, 4  ;;  %s1055_s20 = int_to_ptr.vmem [resolvable:$false] %s1054_s20 }
  0x14   : > { %s1056_s26 = scalar_lea.vmem (!%p369_p10), %s1055_s20, 512 }
  0x17   : > { %v485_v0 = vlaneseq  ;;  %v1158_v1 = vmov 0.0   ;;  %v514_v2 = vld [vmem:[%s1412_s5 + $0x8] sm:$0xff]  ;;  %s440_s25 = scalar_select %p439_p11, %s1148_s12, 1  ;;  %v1159_v4 = vmov 0   ;;  %v516_v5 = vld [vmem:[%s1412_s5 + $0x18] sm:$0xff]  ;;  %v513_v8 = vld [vmem:[%s1412_s5] sm:$0xff] }
  0x18   : > { %621 = vmatprep.mubr.f32.mxu0 %v1158_v1  ;;  %739 = vmatprep.mubr.f32.mxu1 %v1158_v1  ;;  %v515_v9 = vld [vmem:[%s1412_s5 + $0x10] sm:$0xff]  ;;  %vm506_vm0 = vcmask 1040384   ;;  %vm550_vm1 = vcmask 1041408   ;;  %v657_v16 = vld [vmem:[%s1414_s7 + $0x8] sm:$0xff]  ;;  %v656_v20 = vld [vmem:[%s1414_s7] sm:$0xff]  ;;  %vm537_vm2 = vcmask 146432  }
  0x19   : > { %v486_v3 = vshrl.u32 %v485_v0, 7  ;;  %1049 = vset.pattern.permute.xlu1 %v1159_v4  ;;  %1048 = vset.pattern.permute.xlu0 %v1159_v4  ;;  %s964_s28 = sshll.u32 %s440_s25, 1  ;;  %s982_s29 = sshll.u32 %s440_s25, 4  ;;  %v509_v24 = vld [vmem:[%s1411_s4] sm:$0xff]  ;;  %v510_v25 = vld [vmem:[%s1411_s4 + $0x8] sm:$0xff]  ;;  %v511_v26 = vld [vmem:[%s1411_s4 + $0x10] sm:$0xff] }
  0x1a   : > { %524 = vperm.xlu1 %1049, %v514_v2   ;;  %534 = vperm.xlu0 %1048, %v516_v5   ;;  %s465_s23 = scalar_lea.vmem %s1409_s2, %s964_s28  ;;  %s474_s13 = scalar_lea.vmem %s1410_s3, %s964_s28  ;;  %v512_v27 = vld [vmem:[%s1411_s4 + $0x18] sm:$0xff]  ;;  %v654_v56 = vld [vmem:[%s1413_s6] sm:$0xff]  ;;  %vm668_vm3 = vcmask 261120   ;;  %v655_v57 = vld [vmem:[%s1413_s6 + $0x8] sm:$0xff] }
  0x1b   : > { %v491_v6 = vsub.s32 1, %v486_v3  ;;  %v487_v7 = vsub.s32 0, %v486_v3  ;;  %v482_v10 = vld [vmem:[%s465_s23] sm:$0x3]  ;;  %s456_s15 = scalar_lea.vmem %s1408_s1, %s982_s29  ;;  %s446_s28 = scalar_lea.vmem %s1407_s0, %s982_s29 }
  0x1c   : > { %v483_v11 = vld [vmem:[%s474_s13] sm:$0x3]  ;;  %v481_v19 = vld [vmem:[%s456_s15 + $0x8] sm:$0xff]  ;;  %s1326_s13 = sand.u32 1, %s1140_s10   ;;  %s1419_s29 = sshll.u32 %s1148_s12, 8 }
  0x1d   : > { %v492_v12 = vrot.slane %v482_v10, %v491_v6  ;;  %v503_v13 = vrot.slane %v483_v11, %v491_v6  ;;  %v488_v14 = vrot.slane %v482_v10, %v487_v7  ;;  %v499_v15 = vrot.slane %v483_v11, %v487_v7  ;;  %v480_v21 = vld [vmem:[%s456_s15] sm:$0xff]  ;;  %v479_v22 = vld [vmem:[%s446_s28 + $0x8] sm:$0xff]  ;;  %s958_s22 = sshll.u32 %s1326_s13, 4  ;;  %s1335_s25 = scalar_lea.hbm %s1415_s8, %s1419_s29 }
  0x1e   : > { %519 = vperm.xlu1 %1049, %v513_v8   ;;  %529 = vperm.xlu0 %1048, %v515_v9   ;;  %v478_v23 = vld [vmem:[%s446_s28] sm:$0xff]  ;;  %s430_s23 = scalar_lea.vmem [#allocation2], %s958_s22  ;;  %s1339_s15 = scalar_lea.vmem [#allocation4], %s958_s22 }
  0x1f   : > { %v508_v17 = vsel %vm506_vm0, %v492_v12, %v503_v13  ;;  %v507_v18 = vsel %vm506_vm0, %v488_v14, %v499_v15  ;;  %s778_s24 = sshll.u32 %s430_s23, 4  ;;  %s757_s17 = scalar_lea.sflag [#allocation3], %s1326_s13  ;;  %s1337_s24 = int_to_ptr.vmem [resolvable:$true] %s778_s24 }
  0x20   : > { %966 = vmatprep.subr.msk.mxu0 %vm550_vm1, %v508_v17  ;;  %s1050_s28 = scalar_lea.vmem %s1337_s24, 256  ;;  %p1057_p1 = scmp.lt.s32.totalorder %s1337_s24, %s1055_s20 }
  0x21   : > { %967 = vmatpush1.msk.msra.mxu0 %vm550_vm1, %v507_v18  ;;  %p1051_p12 = scmp.ne.s32.totalorder %s1337_s24, %s1050_s28  ;;  %p1058_p2 = scmp.lt.s32.totalorder %s1056_s26, %s1050_s28 }
  0x22   : > { %665 = vperm.xlu1 %1049, %v657_v16   ;;  %585 = vmatprep.subr.mxu0 %v481_v19 }
  0x23   : > { %660 = vperm.xlu0 %1048, %v656_v20   ;;  %586 = vmatpush1.msra.mxu0 %v480_v21  ;;  %p1052_p13 = pnand %p1051_p12, %p1252_p4  ;;  %p1059_p3 = por %p1058_p2, %p1057_p1 }
  0x24   : > { %587 = vmatprep.subr.mxu0 %v479_v22 }
  0x25   : > { %588 = vmatpush1.msra.mxu0 %v478_v23  ;;  %p1053_p0 = pneg %p1052_p13 }
  0x26   : > { %968 = vmatmul.mubr.msk.f32.vlgmr.msra.gmra.mxu0 %vm537_vm2, %v509_v24 }
  0x27   : > { %627 = vmatprep.mubr.f32.mxu0 %v1158_v1  ;;  %p1060_p5 = pnand %p1059_p3, %p1053_p0 }
  0x2a   : > { %969 = vmatmul.mubr.msk.f32.gmra.mxu0 %vm537_vm2, %v510_v25 }
  0x2b   : > { %633 = vmatprep.mubr.f32.mxu0 %v1158_v1 }
  0x2e   : > { %970 = vmatmul.mubr.msk.f32.gmra.mxu0 %vm537_vm2, %v511_v26 }
  0x2f   : > { %639 = vmatprep.mubr.f32.mxu0 %v1158_v1 }
  0x32   : > { %971 = vmatmul.mubr.msk.f32.gmra.mxu0 %vm537_vm2, %v512_v27 }
  0x95   : > { %v535_v32 = vpop.permute.xlu0 %534  ;;  %v525_v35 = vpop.permute.xlu1 %524 }
  0x99   : > { %v530_v37 = vpop.permute.xlu0 %529  ;;  %v520_v43 = vpop.permute.xlu1 %519 }
  0x9d   : > { %v666_v63 = vpop.permute.xlu1 %665 }
  0x9e   : > { %v661_v58 = vpop.permute.xlu0 %660 }
  0xe6   : > { %v623_v28 = vpop.f32.mrf.mxu0 }
  0xe7   : > { %v624_v50 = vadd.f32 %v623_v28, %v520_v43 }
  0xe8   : > { %v625_v29 = vpop.f32.mrf.mxu0 }
  0xe9   : > { %v626_v48 = vadd.f32 %v625_v29, %v520_v43  ;;  %v646_v55 = vmax.f32 %v624_v50, 0.0 }
  0xea   : > { %v629_v30 = vpop.f32.mrf.mxu0 }
  0xeb   : > { %v630_v46 = vadd.f32 %v629_v30, %v525_v35  ;;  %v647_v54 = vmax.f32 %v626_v48, 0.0 }
  0xec   : > { %v631_v31 = vpop.f32.mrf.mxu0 }
  0xed   : > { %v632_v44 = vadd.f32 %v631_v31, %v525_v35  ;;  %v648_v53 = vmax.f32 %v630_v46, 0.0 }
  0xee   : > { %v635_v33 = vpop.f32.mrf.mxu0 }
  0xef   : > { %v636_v42 = vadd.f32 %v635_v33, %v530_v37  ;;  %v649_v52 = vmax.f32 %v632_v44, 0.0 }
  0xf0   : > { %v637_v34 = vpop.f32.mrf.mxu0 }
  0xf1   : > { %v638_v40 = vadd.f32 %v637_v34, %v530_v37  ;;  %v650_v51 = vmax.f32 %v636_v42, 0.0 }
  0xf2   : > { %v641_v36 = vpop.f32.mrf.mxu0 }
  0xf3   : > { %v642_v38 = vadd.f32 %v641_v36, %v535_v32  ;;  %v651_v49 = vmax.f32 %v638_v40, 0.0 }
  0xf4   : > { %v643_v39 = vpop.f32.mrf.mxu0 }
  0xf5   : > { %v644_v41 = vadd.f32 %v643_v39, %v535_v32  ;;  %v652_v47 = vmax.f32 %v642_v38, 0.0 }
  0xf7   : > { %v653_v45 = vmax.f32 %v644_v41, 0.0 }
  0xf9   : > { %699 = vmatprep.subr.mxu1 %v653_v45 }
  0xfa   : > { %700 = vmatpush1.msra.mxu1 %v652_v47 }
  0xfb   : > { %701 = vmatprep.subr.mxu1 %v651_v49 }
  0xfc   : > { %702 = vmatpush1.msra.mxu1 %v650_v51 }
  0xfd   : > { %703 = vmatprep.subr.mxu1 %v649_v52 }
  0xfe   : > { %704 = vmatpush1.msra.mxu1 %v648_v53 }
  0xff   : > { %705 = vmatprep.subr.mxu1 %v647_v54 }
 0x100   : > { %706 = vmatpush1.msra.mxu1 %v646_v55 }
 0x101   : > { %972 = vmatmul.mubr.msk.f32.vlgmr.msra.gmra.mxu1 %vm668_vm3, %v654_v56 }
 0x102   : > { %745 = vmatprep.mubr.f32.mxu1 %v1158_v1 }
 0x105   : > { %973 = vmatmul.mubr.msk.f32.gmra.mxu1 %vm668_vm3, %v655_v57 }
 0x1c1   : > { %v741_v59 = vpop.f32.mrf.mxu1 }
 0x1c2   : > { %v742_v60 = vadd.f32 %v741_v59, %v661_v58 }
 0x1c3   : > { %v743_v61 = vpop.f32.mrf.mxu1 }
 0x1c4   : > { %752 = vst [vmem:[%s430_s23] sm:$0xff] %v742_v60  ;;  %v744_v62 = vadd.f32 %v743_v61, %v661_v58 }
 0x1c5   : > { %v747_v0 = vpop.f32.mrf.mxu1 }
 0x1c6   : > { %753 = vst [vmem:[%s430_s23 + $0x8] sm:$0xff] %v744_v62  ;;  %v748_v1 = vadd.f32 %v747_v0, %v666_v63 }
 0x1c7   : > { %v749_v2 = vpop.f32.mrf.mxu1 }
 0x1c8   : > { %1063 = shalt.err (!%p1060_p5)
}
 0x1c9   : > { %s1064_s22 = scalar_lea.hbm %s1335_s25, 256  ;;  %s1068_s18 = scalar_lea.hbm %s1415_s8, 512 }
 0x1ca   : > { %p1065_p6 = scmp.ne.s32.totalorder %s1335_s25, %s1064_s22  ;;  %p1069_p10 = scmp.lt.s32.totalorder %s1335_s25, %s1415_s8 }
 0x1cb   : > { %p1070_p11 = scmp.lt.s32.totalorder %s1068_s18, %s1064_s22 }
 0x1cc   : > { %p1066_p7 = pnand %p1065_p6, %p1252_p4 }
 0x1cd   : > { %p1071_p12 = por %p1070_p11, %p1069_p10 }
 0x1ce   : > { %p1067_p9 = pneg %p1066_p7 }
 0x1d0   : > { %p1072_p13 = pnand %p1071_p12, %p1067_p9 }
 0x1d2   : > { %1075 = shalt.err (!%p1072_p13)
}
 0x1d3   : > { %986 = dma.vmem_to_hbm [thread:$0]  (%p1252_p4), %s1337_s24, 256, %s1335_s25, %s757_s17   ;;  %754 = vst [vmem:[%s1339_s15] sm:$0xff] %v748_v1  ;;  %v750_v3 = vadd.f32 %v749_v2, %v666_v63 }
 0x1d4   : > { %s1425_s28 = sshll.u32 %s1148_s12, 8  ;;  %s1426_s26 = sshll.u32 %s1339_s15, 4  ;;  %s795_s26 = int_to_ptr.vmem [resolvable:$true] %s1426_s26 }
 0x1d5   : > { %s792_s20 = scalar_lea.hbm %s1416_s9, %s1425_s28  ;;  %755 = vst [vmem:[%s1339_s15 + $0x8] sm:$0xff] %v750_v3  ;;  %s762_s22 = scalar_lea.sflag [#allocation5], %s1326_s13 }
 0x1d6   : > { %s1076_s23 = scalar_lea.vmem %s795_s26, 256  ;;  %s1161_s27 = smov [#allocation4]  }
 0x1d7   : > { %p1077_p0 = scmp.ne.s32.totalorder %s795_s26, %s1076_s23  ;;  %s1080_s18 = sshll.u32 %s1161_s27, 4  ;;  %s1081_s18 = int_to_ptr.vmem [resolvable:$false] %s1080_s18 }
 0x1d8   : > { %s1082_s24 = scalar_lea.vmem %s1081_s18, 512  ;;  %p1083_p3 = scmp.lt.s32.totalorder %s795_s26, %s1081_s18 }
 0x1d9   : > { %p1078_p1 = pnand %p1077_p0, %p1252_p4  ;;  %p1084_p5 = scmp.lt.s32.totalorder %s1082_s24, %s1076_s23 }
 0x1db   : > { %p1079_p2 = pneg %p1078_p1  ;;  %p1085_p6 = por %p1084_p5, %p1083_p3 }
 0x1dd   : > { %p1086_p7 = pnand %p1085_p6, %p1079_p2 }
 0x1df   : > { %1089 = shalt.err (!%p1086_p7)
}
 0x1e0   : > { %s1090_s12 = scalar_lea.hbm %s792_s20, 256  ;;  %s1094_s15 = scalar_lea.hbm %s1416_s9, 512 }
 0x1e1   : > { %p1091_p9 = scmp.ne.s32.totalorder %s792_s20, %s1090_s12  ;;  %p1095_p12 = scmp.lt.s32.totalorder %s792_s20, %s1416_s9 }
 0x1e2   : > { %p1096_p13 = scmp.lt.s32.totalorder %s1094_s15, %s1090_s12 }
 0x1e3   : > { %p1092_p10 = pnand %p1091_p9, %p1252_p4 }
 0x1e4   : > { %p1097_p0 = por %p1096_p13, %p1095_p12 }
 0x1e5   : > { %p1093_p11 = pneg %p1092_p10 }
 0x1e7   : > { %p1098_p1 = pnand %p1097_p0, %p1093_p11 }
 0x1e9   : > { %1101 = shalt.err (!%p1098_p1)
}
 0x1ea   : > { %987 = dma.vmem_to_hbm [thread:$0]  (%p1252_p4), %s795_s26, 256, %s792_s20, %s762_s22  }
 0x1eb PF: > { %p997_p2 = scmp.ge.s32.totalorder %s1156_s14, 2  ;;  %s806_s29 = sand.u32 1, %s1136_s30  }
 0x1ec   : > { %s807_s16 = scalar_lea.sflag [#allocation3], %s806_s29 }
 0x1ed   : > { %p991_p3 = pnand %p997_p2, %p1259_p8 }
 0x1ef   : > { %p992_p5 = pneg %p991_p3 }
 0x1f1   : > { %1127 = dma.done.wait (%p992_p5), %s807_s16, 256  }
 0x1f2   : > { %1129 = vsyncadd (%p992_p5), %s807_s16, 4294967040  ;;  %s816_s23 = scalar_lea.sflag [#allocation5], %s806_s29 }
 0x1f3   : > { %1131 = dma.done.wait (%p992_p5), %s816_s23, 256  }
 0x1f4   : > { %1133 = vsyncadd (%p992_p5), %s816_s23, 4294967040  ;;  %s26_s14 = sadd.s32 1, %s1156_s14   ;;  %s1427_s19 = sld [smem:[#allocation10_spill]] }
 0x1f5   : > { %p23_p6 = scmp.ge.s32.totalorder %s26_s14, 4   ;;  %s1428_s12 = sld [smem:[#allocation8_spill]] }
 0x1f6   : > { %s1429_s13 = sld [smem:[#allocation9_spill]]  ;;  %s1430_s30 = smov %s1140_s10 }
 0x1f7   : > { %s1431_s10 = smov %s1144_s11  ;;  %25 = sbr.rel (!%p23_p6) target bundleno = 6 (0x6), region = 113 }
 0x1fa   : > { %s1432_s11 = smov %s1427_s19 }
 0x1fc   :  { %821 = vsyncpa [#allocation3], 1 }
 0x1fd   :  { %823 = vsyncpa [#allocation3 + $0x1], 1 }
 0x1fe   :  { %824 = vsyncpa [#allocation5], 1 }
 0x1ff   :  { %826 = vsyncpa [#allocation5 + $0x1], 1 }

</bundles_post_ra>
